<compile_context>
chip_gen: v7x
topology: tpu7x:2x2x1
jax: 0.10.0
libtpu: 0.0.40
codegen_flags: <defaults>
</compile_context>

<pallas_src>
import jax
import jax.numpy as jnp
from jax import lax
from jax.experimental import pallas as pl
from jax.experimental.pallas import tpu as pltpu

BN_EPS = 1e-5


def fc_bn_relu_kernel(x_ref, w_ref, gamma_ref, beta_ref, o_ref):
    # x: (N, Fin), w: (FN_TILE, Fin) [PyTorch Linear layout slice],
    # gamma/beta: (1, FN_TILE), o: (N, FN_TILE)

    # Linear (bias omitted: exactly cancelled by train-mode BN).
    y = lax.dot_general(
        x_ref[...], w_ref[...],
        dimension_numbers=(((1,), (1,)), ((), ())),
        preferred_element_type=jnp.float32,
    )  # (N, FN_TILE), float32 accumulation

    inv_n = 1.0 / y.shape[0]

    # BatchNorm1d, training mode: batch mean and *biased* variance over the batch dim.
    # Two-pass (centered) form kept for numerical robustness.
    mean = jnp.sum(y, axis=0, keepdims=True) * inv_n           # (1, FN_TILE)
    diff = y - mean
    var = jnp.sum(diff * diff, axis=0, keepdims=True) * inv_n  # biased variance

    # Fold gamma into the per-feature normalization scale (1 x FN_TILE work),
    # leaving only one mul + one add on the (N, FN_TILE) tensor.
    scale = gamma_ref[...].astype(jnp.float32) * lax.rsqrt(var + BN_EPS)
    out = diff * scale + beta_ref[...].astype(jnp.float32)

    # ReLU
    o_ref[...] = jnp.maximum(out, 0.0).astype(o_ref.dtype)

    # TODO(synk): dropout branch of fc_block is only built when dropout != False;
    # the default module has no dropout, so none is applied here.


def _pick_fout_tile(fout):
    # Lane-dense tiles: prefer bigger tiles (amortize per-step overhead) while still
    # leaving >1 grid step to shard across TensorCores when Fout allows it.
    for cand in (512, 256, 128):
        if fout % cand == 0 and fout > cand:
            return cand
    if fout % 128 == 0:
        return min(fout, 512) if fout % 512 == 0 else (256 if fout % 256 == 0 else 128)
    return fout  # full-extent block (allowed: equals array dim)


def fc_block_forward(x, weight, bias, gamma, beta):
    """x: (N, Fin); weight: (Fout, Fin) (PyTorch layout); bias/gamma/beta: (Fout,).

    `bias` is accepted for interface parity but intentionally unused — a constant
    per-feature bias is exactly removed by the train-mode BatchNorm that follows.
    The batch dimension N is kept whole in every block so BN statistics are exact.
    """
    del bias  # cancelled by train-mode BatchNorm (mean subtraction)

    N, Fin = x.shape
    Fout = weight.shape[0]

    fn_tile = _pick_fout_tile(Fout)
    grid = (Fout // fn_tile,)

    g2 = gamma.reshape(1, Fout)
    be2 = beta.reshape(1, Fout)

    return pl.pallas_call(
        fc_bn_relu_kernel,
        out_shape=jax.ShapeDtypeStruct((N, Fout), x.dtype),
        grid_spec=pltpu.PrefetchScalarGridSpec(
            num_scalar_prefetch=0,
            grid=grid,
            in_specs=[
                # Full batch + full Fin every step (grid-invariant block -> stays resident).
                pl.BlockSpec((N, Fin), lambda j: (0, 0)),
                # Weight stays (Fout, Fin); tile its rows per grid step.
                pl.BlockSpec((fn_tile, Fin), lambda j: (j, 0)),
                pl.BlockSpec((1, fn_tile), lambda j: (0, j)),
                pl.BlockSpec((1, fn_tile), lambda j: (0, j)),
            ],
            out_specs=pl.BlockSpec((N, fn_tile), lambda j: (0, j)),
        ),
        # Per-feature BN stats => Fout tiles are fully independent => parallel axis.
        compiler_params=pltpu.CompilerParams(
            dimension_semantics=("parallel",)),
    )(x, weight, g2, be2)


def reference_forward(x, weight, bias, gamma, beta):
    """Plain-JAX reference matching PyTorch fc_block.forward in training mode."""
    y = x @ weight.T + bias
    mean = jnp.mean(y, axis=0, keepdims=True)
    var = jnp.mean((y - mean) ** 2, axis=0, keepdims=True)
    y_hat = (y - mean) / jnp.sqrt(var + BN_EPS)
    out = gamma * y_hat + beta
    return jnp.maximum(out, 0.0)


def _make_inputs(key, n, fin, fout):
    kx, kw, kb, kg, kbe = jax.random.split(key, 5)
    x = jax.random.normal(kx, (n, fin), dtype=jnp.float32)
    bound = 1.0 / (fin ** 0.5)
    weight = jax.random.uniform(kw, (fout, fin), minval=-bound, maxval=bound,
                                dtype=jnp.float32)
    bias = jax.random.uniform(kb, (fout,), minval=-bound, maxval=bound,
                              dtype=jnp.float32)
    gamma = 1.0 + 0.1 * jax.random.normal(kg, (fout,), dtype=jnp.float32)
    beta = 0.1 * jax.random.normal(kbe, (fout,), dtype=jnp.float32)
    return x, weight, bias, gamma, beta


if __name__ == "__main__":
    key = jax.random.PRNGKey(0)
    k1, k2 = jax.random.split(key)

    # Primary case: lane-dense Fout, multi-step parallel grid.
    N, IN_FEATURES, OUT_FEATURES = 8, 128, 512
    args = _make_inputs(k1, N, IN_FEATURES, OUT_FEATURES)
    out = jax.block_until_ready(fc_block_forward(*args))
    ref = reference_forward(*args)
    assert out.shape == (N, OUT_FEATURES)
    assert jnp.allclose(out, ref, atol=1e-4, rtol=1e-4), "mismatch vs reference (512)"

    # Ragged case: Fout not a multiple of 128 -> single full-extent block (fallback path).
    args2 = _make_inputs(k2, 8, 96, 200)
    out2 = jax.block_until_ready(fc_block_forward(*args2))
    ref2 = reference_forward(*args2)
    assert out2.shape == (8, 200)
    assert jnp.allclose(out2, ref2, atol=1e-4, rtol=1e-4), "mismatch vs reference (200)"

    print("KERNEL_OK")
</pallas_src>

<mosaic_0001>
module attributes {stable_mosaic.version = 11 : i64} {
  func.func @fc_bn_relu_kernel(%arg0: i32, %arg1: memref<8x128xf32, #tpu.memory_space<vmem>>, %arg2: memref<256x128xf32, #tpu.memory_space<vmem>>, %arg3: memref<1x256xf32, #tpu.memory_space<vmem>>, %arg4: memref<1x256xf32, #tpu.memory_space<vmem>>, %arg5: memref<8x256xf32, #tpu.memory_space<vmem>>) attributes {dimension_semantics = [#tpu.dimension_semantics<parallel>], iteration_bounds = array<i64: 2>, scalar_prefetch = 0 : i64, scratch_operands = 0 : i64, tpu.core_type = #tpu.core_type<tc>, window_params = [{pipeline_mode = #tpu.pipeline_mode<synchronous>, transform_indices = @transform_0, window_bounds = array<i64: 8, 128>}, {transform_indices = @transform_1, window_bounds = array<i64: 256, 128>}, {transform_indices = @transform_2, window_bounds = array<i64: 1, 256>}, {transform_indices = @transform_3, window_bounds = array<i64: 1, 256>}, {transform_indices = @transform_4, window_bounds = array<i64: 8, 256>}]} {
    %c0 = arith.constant 0 : index
    %c0_0 = arith.constant 0 : index
    %0 = vector.load %arg1[%c0, %c0_0] : memref<8x128xf32, #tpu.memory_space<vmem>>, vector<8x128xf32>
    %c0_1 = arith.constant 0 : index
    %c0_2 = arith.constant 0 : index
    %1 = vector.load %arg2[%c0_1, %c0_2] : memref<256x128xf32, #tpu.memory_space<vmem>>, vector<256x128xf32>
    %cst = arith.constant dense<0.000000e+00> : vector<8x256xf32>
    %2 = tpu.matmul %0, %1, %cst {dimension_numbers = #tpu.dot_dimension_numbers<[1], [1], [0], [0], [0, 0, 1, 0], [], []>} : vector<8x128xf32>, vector<256x128xf32>, vector<8x256xf32> -> vector<8x256xf32>
    %cst_3 = arith.constant dense<0.000000e+00> : vector<256xf32>
    %3 = vector.multi_reduction <add>, %2, %cst_3 [0] : vector<8x256xf32> to vector<256xf32>
    %4 = vector.shape_cast %3 : vector<256xf32> to vector<1x256xf32>
    %cst_4 = arith.constant 1.250000e-01 : f32
    %5 = vector.broadcast %cst_4 : f32 to vector<1x256xf32>
    %6 = arith.mulf %4, %5 : vector<1x256xf32>
    %7 = vector.broadcast %6 : vector<1x256xf32> to vector<8x256xf32>
    %8 = arith.subf %2, %7 : vector<8x256xf32>
    %9 = arith.mulf %8, %8 : vector<8x256xf32>
    %cst_5 = arith.constant dense<0.000000e+00> : vector<256xf32>
    %10 = vector.multi_reduction <add>, %9, %cst_5 [0] : vector<8x256xf32> to vector<256xf32>
    %11 = vector.shape_cast %10 : vector<256xf32> to vector<1x256xf32>
    %cst_6 = arith.constant 1.250000e-01 : f32
    %12 = vector.broadcast %cst_6 : f32 to vector<1x256xf32>
    %13 = arith.mulf %11, %12 : vector<1x256xf32>
    %c0_7 = arith.constant 0 : index
    %c0_8 = arith.constant 0 : index
    %14 = vector.load %arg3[%c0_7, %c0_8] : memref<1x256xf32, #tpu.memory_space<vmem>>, vector<1x256xf32>
    %cst_9 = arith.constant 9.99999974E-6 : f32
    %15 = vector.broadcast %cst_9 : f32 to vector<1x256xf32>
    %16 = arith.addf %13, %15 : vector<1x256xf32>
    %17 = math.rsqrt %16 : vector<1x256xf32>
    %18 = arith.mulf %14, %17 : vector<1x256xf32>
    %19 = vector.broadcast %18 : vector<1x256xf32> to vector<8x256xf32>
    %20 = arith.mulf %8, %19 : vector<8x256xf32>
    %c0_10 = arith.constant 0 : index
    %c0_11 = arith.constant 0 : index
    %21 = vector.load %arg4[%c0_10, %c0_11] : memref<1x256xf32, #tpu.memory_space<vmem>>, vector<1x256xf32>
    %22 = vector.broadcast %21 : vector<1x256xf32> to vector<8x256xf32>
    %23 = arith.addf %20, %22 : vector<8x256xf32>
    %cst_12 = arith.constant 0.000000e+00 : f32
    %24 = vector.broadcast %cst_12 : f32 to vector<8x256xf32>
    %25 = arith.maximumf %23, %24 : vector<8x256xf32>
    %c0_13 = arith.constant 0 : index
    %c0_14 = arith.constant 0 : index
    %26 = vector.load %arg5[%c0_13, %c0_14] : memref<8x256xf32, #tpu.memory_space<vmem>>, vector<8x256xf32>
    tpu.vector_store %arg5[%c0_13, %c0_14], %25 {strides = array<i32>} : memref<8x256xf32, #tpu.memory_space<vmem>>, vector<8x256xf32>,
    return
  }
  func.func @transform_0(%arg0: i32) -> (i32, i32) {
    %c0_i32 = arith.constant 0 : i32
    %c0_i32_0 = arith.constant 0 : i32
    %c0_i32_1 = arith.constant 0 : i32
    return %c0_i32, %c0_i32_0 : i32, i32
  }
  func.func @transform_1(%arg0: i32) -> (i32, i32) {
    %c0_i32 = arith.constant 0 : i32
    %c0_i32_0 = arith.constant 0 : i32
    return %arg0, %c0_i32 : i32, i32
  }
  func.func @transform_2(%arg0: i32) -> (i32, i32) {
    %c0_i32 = arith.constant 0 : i32
    %c0_i32_0 = arith.constant 0 : i32
    return %c0_i32, %arg0 : i32, i32
  }
  func.func @transform_3(%arg0: i32) -> (i32, i32) {
    %c0_i32 = arith.constant 0 : i32
    %c0_i32_0 = arith.constant 0 : i32
    return %c0_i32, %arg0 : i32, i32
  }
  func.func @transform_4(%arg0: i32) -> (i32, i32) {
    %c0_i32 = arith.constant 0 : i32
    %c0_i32_0 = arith.constant 0 : i32
    return %c0_i32, %arg0 : i32, i32
  }
}

</mosaic_0001>

<bundles_post_ra>
// kernel: tpu_custom_call.1
= control target key start
LH: loop header
LB: loop body
LE: loop exit
PB: predicated region body
PF: predicated region fallthrough
CT: control target
= control target key end

     0   :  { %9 = vsyncpa [#allocation3], 0  ;;  %s1124_s0 = inlined_call_operand.hbm [shape: f32[8,128], index: 0, kind: input, shape index: {}]   ;;  %s1125_s1 = inlined_call_operand.hbm [shape: f32[512,128], index: 1, kind: input, shape index: {}]   ;;  %s1126_s2 = inlined_call_operand.vmem [shape: f32[1,512], index: 2, kind: input, shape index: {}]   ;;  %s1127_s3 = inlined_call_operand.vmem [shape: f32[1,512], index: 3, kind: input, shape index: {}]   ;;  %s1128_s4 = inlined_call_operand.hbm [shape: f32[8,512], index: 4, kind: output, shape index: {}]  }
   0x1   :  { %10 = vsyncpa [#allocation6], 0 }
   0x2   :  { %12 = vsyncpa [#allocation6 + $0x1], 0 }
   0x3   :  { %13 = vsyncpa [#allocation4], 0 }
   0x4   :  { %15 = vsyncpa [#allocation4 + $0x1], 0  ;;  %s886_s15 = smov 0   ;;  %s888_s16 = smov 0  }
   0x5   :  { %s890_s17 = smov 0   ;;  %s892_s18 = smov 0  }
   0x6 LB: > { %s907_s19 = sadd.s32 4294967295, %s853_s18   ;;  %s575_s20 = sadd.s32 4294967294, %s853_s18   ;;  %s853_s18 = sphi %s892_s18, %s1153_s18   ;;  %s849_s17 = sphi %s890_s17, %s1152_s17   ;;  %s845_s16 = sphi %s888_s16, %s1151_s16   ;;  %s841_s15 = sphi %s886_s15, %s1150_s15  }
   0x7   : > { %s911_s21 = sadd.s32 1, %s853_s18   ;;  %s49_s22 = sadd.s32 1, %s849_s17 }
   0x8   : > { %s46_s23 = ssub.s32 %s853_s18, %s911_s21  ;;  %p56_p0 = scmp.ne.s32.totalorder %s849_s17, %s845_s16 }
   0x9   : > { %p47_p1 = scmp.eq.s32.totalorder %s46_s23, 0  ;;  %p57_p2 = scmp.eq.s32.totalorder %s853_s18, 0 }
   0xa   : > { %p62_p3 = scmp.ne.s32.totalorder %s845_s16, %s841_s15  ;;  %p1129_p4 = scmp.eq.s32.totalorder %s907_s19, 0 }
   0xb   : > { %s923_s24 = scalar_select %p47_p1, %s849_s17, %s49_s22  }
   0xc   : > { %p925_p5 = por %p57_p2, %p56_p0  ;;  %p931_p6 = por %p1129_p4, %p62_p3 }
   0xd   : > { %p138_p7 = scmp.eq.s32.totalorder %s907_s19, 1  ;;  %p144_p8 = scmp.eq.s32.totalorder %s575_s20, 1 }
   0xe   : > { %s1135_s26 = scalar_select %p931_p6, 1, 0 }
   0xf   : > { %p576_p9 = scmp.ge.s32.totalorder %s853_s18, 1  ;;  %p151_p10 = scmp.lt.s32.totalorder %s853_s18, 3 }
  0x10   : > { %p938_p11 = por %p138_p7, %p56_p0  ;;  %p942_p12 = por %p144_p8, %p62_p3 }
  0x11   : > { %p946_p13 = pnand %p576_p9, %p151_p10  ;;  %s855_s30 = smov [#allocation2]  }
  0x12   : > { %s1136_s27 = scalar_select %p938_p11, 1, 0 }
  0x13   : > { %s1137_s28 = scalar_select %p942_p12, 1, 0 }
  0x14   : > { %s1138_s29 = scalar_select %p946_p13, 1, 0 }
  0x15   : > { %p669_p2 = pneg %p946_p13  ;;  %s164_s5 = sshll.u32 %s855_s30, 4  ;;  %s165_s5 = int_to_ptr.vmem [resolvable:$true] %s164_s5 }
  0x16   : > { %p682_p4 = scmp.lt.s32.totalorder %s853_s18, 2  ;;  %p1139_p0 = scmp.eq.s32.totalorder %s907_s19, 0 }
  0x17   : > { %s175_s7 = sand.u32 1, %s849_s17   ;;  %s725_s12 = scalar_lea.hbm %s1124_s0, 128 }
  0x18   : > { %p956_p7 = pnand %p669_p2, %p1139_p0  ;;  %p963_p3 = pnand %p682_p4, %p925_p5 }
  0x19   : > { %s579_s9 = sshll.u32 %s175_s7, 8  ;;  %p726_p8 = scmp.ne.s32.totalorder %s1124_s0, %s725_s12 }
  0x1a   : > { %s1141_s8 = scalar_select %p963_p3, 1, 0 }
  0x1b   : > { %p727_p9 = pneg %p956_p7  ;;  %p732_p4 = scmp.lt.u32.totalorder %s725_s12, %s1124_s0 }
  0x1d   : > { %p728_p10 = pnand %p727_p9, %p726_p8 }
  0x1f   : > { %p729_p2 = pneg %p728_p10 }
  0x21   : > { %p734_p5 = pnand %p732_p4, %p729_p2 }
  0x23   : > { %737 = shalt.err (!%p734_p5)
}
  0x24   : > { %s738_s23 = scalar_lea.vmem %s165_s5, 128  ;;  %p746_p11 = scmp.lt.s32.totalorder %s165_s5, %s165_s5 }
  0x25   : > { %p739_p0 = scmp.ne.s32.totalorder %s165_s5, %s738_s23  ;;  %p747_p6 = scmp.lt.s32.totalorder %s738_s23, %s738_s23 }
  0x27   : > { %p741_p1 = pnand %p739_p0, %p727_p9  ;;  %p748_p13 = por %p747_p6, %p746_p11 }
  0x29   : > { %p742_p12 = pneg %p741_p1 }
  0x2b   : > { %p749_p3 = pnand %p748_p13, %p742_p12 }
  0x2d   : > { %752 = shalt.err (!%p749_p3)
}
  0x2e   : > { %672 = dma.hbm_to_vmem [thread:$0]  (!%p956_p7), %s1124_s0, 128, %s165_s5, [#allocation3]  }
  0x2f   : > { %s593_s10 = sshll.u32 %s853_s18, 12  ;;  %s179_s11 = scalar_lea.vmem [#allocation5], %s579_s9 }
  0x30   : > { %s186_s12 = sshll.u32 %s179_s11, 4  ;;  %s987_s20 = scalar_lea.hbm %s1125_s1, %s593_s10  ;;  %s989_s12 = int_to_ptr.vmem [resolvable:$true] %s186_s12 }
  0x31   : > { %s991_s6 = scalar_lea.sflag [#allocation6], %s175_s7  ;;  %s753_s22 = scalar_lea.hbm %s987_s20, 4096 }
  0x32   : > { %p754_p6 = scmp.ne.s32.totalorder %s987_s20, %s753_s22  ;;  %p1142_p11 = scmp.ne.s32.totalorder %s1141_s8, 0 }
  0x33   : > { %s758_s23 = scalar_lea.hbm %s1125_s1, 8192  ;;  %p759_p7 = scmp.lt.u32.totalorder %s987_s20, %s1125_s1 }
  0x34   : > { %p755_p12 = pneg %p1142_p11  ;;  %p760_p3 = scmp.lt.u32.totalorder %s758_s23, %s753_s22 }
  0x35   : > { %p762_p9 = scmp.lt.u32.totalorder %s753_s22, %s987_s20 }
  0x36   : > { %p756_p13 = pnand %p755_p12, %p754_p6  ;;  %p761_p8 = por %p760_p3, %p759_p7 }
  0x38   : > { %p757_p1 = pneg %p756_p13  ;;  %p763_p10 = por %p762_p9, %p761_p8 }
  0x3a   : > { %p764_p2 = pnand %p763_p10, %p757_p1 }
  0x3c   : > { %767 = shalt.err (!%p764_p2)
}
  0x3d   : > { %s768_s7 = scalar_lea.vmem %s989_s12, 4096  ;;  %s856_s10 = smov [#allocation5]  }
  0x3e   : > { %p769_p4 = scmp.ne.s32.totalorder %s989_s12, %s768_s7  ;;  %s773_s11 = sshll.u32 %s856_s10, 4  ;;  %s774_s11 = int_to_ptr.vmem [resolvable:$false] %s773_s11 }
  0x3f   : > { %s775_s13 = scalar_lea.vmem %s774_s11, 8192  ;;  %p776_p6 = scmp.lt.s32.totalorder %s989_s12, %s774_s11 }
  0x40   : > { %p771_p5 = pnand %p769_p4, %p755_p12  ;;  %p777_p13 = scmp.lt.s32.totalorder %s775_s13, %s768_s7 }
  0x42   : > { %p772_p0 = pneg %p771_p5  ;;  %p778_p7 = por %p777_p13, %p776_p6 }
  0x44   : > { %p779_p3 = pnand %p778_p7, %p772_p0 }
  0x46   : > { %782 = shalt.err (!%p779_p3)
}
  0x47   : > { %s857_s14 = smov 128   ;;  %s858_s22 = smov 8  }
  0x48   : > { %676 = dma.hbm_to_vmem [thread:$0]  (!%p1142_p11), %s987_s20, 4096, %s989_s12, %s991_s6, %s857_s14, %s857_s14, %s858_s22  }
  0x49   : > { %p1143_p12 = scmp.ne.s32.totalorder %s1138_s29, 0 }
  0x4a   : > { %p1144_p1 = scmp.eq.s32.totalorder (!%p1143_p12), %s907_s19, 0 }
  0x4b   : > { %214 = sbr.rel (%p1143_p12) target bundleno = 442 (0x1ba), region = 36 }
  0x52   : > { %828 = dma.done.wait (%p1144_p1), [#allocation3], 128   ;;  %p1145_p8 = pmov %p1144_p1 }
  0x53   : > { %s1026_s5 = sand.u32 1, %s845_s16   ;;  %p1146_p11 = scmp.ne.s32.totalorder %s1135_s26, 0 }
  0x54   : > { %830 = vsyncadd (%p1145_p8), [#allocation3], 4294967168  ;;  %s584_s9 = sshll.u32 %s1026_s5, 8  ;;  %s221_s23 = scalar_lea.sflag [#allocation6], %s1026_s5 }
  0x55   : > { %s1030_s25 = scalar_lea.vmem [#allocation5], %s584_s9 }
  0x56   : > { %832 = dma.done.wait (%p1146_p11), %s221_s23, 4096  }
  0x57   : > { %834 = vsyncadd (%p1146_p11), %s221_s23, 4294963200  ;;  %v286_v0 = vld [vmem:[%s1030_s25 + $0x80] sm:$0xff]  ;;  %v287_v1 = vld [vmem:[%s1030_s25 + $0x88] sm:$0xff]  ;;  %s586_s26 = sshll.u32 %s907_s19, 1  ;;  %s585_s7 = sshll.u32 %s1026_s5, 4 }
  0x58   : > { %v270_v2 = vld [vmem:[%s1030_s25] sm:$0xff]  ;;  %v629_v3 = vpack.c.bf16 %v287_v1, %v286_v0  ;;  %v271_v4 = vld [vmem:[%s1030_s25 + $0x8] sm:$0xff]  ;;  %v288_v5 = vld [vmem:[%s1030_s25 + $0x90] sm:$0xff]  ;;  %p259_p9 = scmp.lt.s32.totalorder %s586_s26, 3  ;;  %s594_s10 = sshll.u32 %s907_s19, 8 }
  0x59   : > { %v289_v6 = vld [vmem:[%s1030_s25 + $0x98] sm:$0xff]  ;;  %v631_v7 = vpack.c.bf16 %v271_v4, %v270_v2  ;;  %v272_v9 = vld [vmem:[%s1030_s25 + $0x10] sm:$0xff]  ;;  %v290_v11 = vld [vmem:[%s1030_s25 + $0xa0] sm:$0xff]  ;;  %s256_s11 = scalar_lea.vmem [#allocation7], %s585_s7  ;;  %s1080_s9 = scalar_lea.hbm %s1128_s4, %s594_s10 }
  0x5a   : > { %v633_v8 = vpack.c.bf16 %v289_v6, %v288_v5  ;;  %630 = vmatprep.subr.bf16.mxu0 %v629_v3  ;;  %v273_v10 = vld [vmem:[%s1030_s25 + $0x18] sm:$0xff]  ;;  %v291_v12 = vld [vmem:[%s1030_s25 + $0xa8] sm:$0xff]  ;;  %v274_v16 = vld [vmem:[%s1030_s25 + $0x20] sm:$0xff]  ;;  %s1155_s26 = smov (!%p259_p9, %s586_s26), 3  ;;  %s475_s13 = sshll.u32 %s256_s11, 4  ;;  %s1082_s13 = int_to_ptr.vmem [resolvable:$true] %s475_s13 }
  0x5b   : > { %632 = vmatpush3.bf16.xpose.msra.mxu0 %v631_v7  ;;  %v635_v13 = vpack.c.bf16 %v273_v10, %v272_v9  ;;  %v637_v14 = vpack.c.bf16 %v291_v12, %v290_v11  ;;  %v269_v15 = vld [vmem:[#allocation2] sm:$0xff]  ;;  %v275_v17 = vld [vmem:[%s1030_s25 + $0x28] sm:$0xff]  ;;  %v292_v18 = vld [vmem:[%s1030_s25 + $0xb0] sm:$0xff]  ;;  %s261_s12 = scalar_lea.vmem %s1126_s2, %s1155_s26  ;;  %s266_s30 = scalar_lea.vmem %s1127_s3, %s1155_s26 }
  0x5c   : > { %634 = vmatprep.subr.bf16.mxu0 %v633_v8  ;;  %627 = vmatprep.mubr.f32.mxu0 %v269_v15  ;;  %v293_v19 = vld [vmem:[%s1030_s25 + $0xb8] sm:$0xff]  ;;  %v639_v20 = vpack.c.bf16 %v275_v17, %v274_v16  ;;  %v276_v22 = vld [vmem:[%s1030_s25 + $0x30] sm:$0xff]  ;;  %v294_v24 = vld [vmem:[%s1030_s25 + $0xc0] sm:$0xff]  ;;  %s461_s23 = scalar_lea.sflag [#allocation4], %s1026_s5  ;;  %s783_s19 = scalar_lea.vmem %s1082_s13, 256 }
  0x5d   : > { %v641_v21 = vpack.c.bf16 %v293_v19, %v292_v18  ;;  %v277_v23 = vld [vmem:[%s1030_s25 + $0x38] sm:$0xff]  ;;  %v295_v25 = vld [vmem:[%s1030_s25 + $0xc8] sm:$0xff]  ;;  %v278_v28 = vld [vmem:[%s1030_s25 + $0x40] sm:$0xff]  ;;  %p784_p10 = scmp.ne.s32.totalorder %s1082_s13, %s783_s19  ;;  %p1147_p2 = scmp.ne.s32.totalorder %s1136_s27, 0 }
  0x5e   : > { %v643_v26 = vpack.c.bf16 %v277_v23, %v276_v22  ;;  %v645_v27 = vpack.c.bf16 %v295_v25, %v294_v24  ;;  %v279_v29 = vld [vmem:[%s1030_s25 + $0x48] sm:$0xff]  ;;  %v296_v30 = vld [vmem:[%s1030_s25 + $0xd0] sm:$0xff]  ;;  %v297_v31 = vld [vmem:[%s1030_s25 + $0xd8] sm:$0xff]  ;;  %v416_v23 = vlaneseq }
  0x5f   : > { %v647_v32 = vpack.c.bf16 %v279_v29, %v278_v28  ;;  %v649_v33 = vpack.c.bf16 %v297_v31, %v296_v30  ;;  %v280_v34 = vld [vmem:[%s1030_s25 + $0x50] sm:$0xff]  ;;  %v281_v35 = vld [vmem:[%s1030_s25 + $0x58] sm:$0xff]  ;;  %v298_v36 = vld [vmem:[%s1030_s25 + $0xe0] sm:$0xff]  ;;  %p785_p4 = pnand %p784_p10, %p1147_p2 }
  0x60   : > { %v299_v37 = vld [vmem:[%s1030_s25 + $0xe8] sm:$0xff]  ;;  %v651_v38 = vpack.c.bf16 %v281_v35, %v280_v34  ;;  %v282_v40 = vld [vmem:[%s1030_s25 + $0x60] sm:$0xff]  ;;  %v300_v42 = vld [vmem:[%s1030_s25 + $0xf0] sm:$0xff]  ;;  %v417_v25 = vshrl.u32 %v416_v23, 7 }
  0x61   : > { %v653_v39 = vpack.c.bf16 %v299_v37, %v298_v36  ;;  %v283_v41 = vld [vmem:[%s1030_s25 + $0x68] sm:$0xff]  ;;  %v301_v43 = vld [vmem:[%s1030_s25 + $0xf8] sm:$0xff]  ;;  %v284_v46 = vld [vmem:[%s1030_s25 + $0x70] sm:$0xff]  ;;  %p786_p5 = pneg %p785_p4 }
  0x62   : > { %v655_v44 = vpack.c.bf16 %v283_v41, %v282_v40  ;;  %v657_v45 = vpack.c.bf16 %v301_v43, %v300_v42  ;;  %v285_v47 = vld [vmem:[%s1030_s25 + $0x78] sm:$0xff]  ;;  %v436_v34 = vsub.s32 1, %v417_v25  ;;  %s860_s25 = smov [#allocation7]  }
  0x63   : > { %636 = vmatpush3.bf16.xpose.msra.mxu0 %v635_v13  ;;  %v659_v48 = vpack.c.bf16 %v285_v47, %v284_v46  ;;  %v405_v31 = vld [vmem:[%s261_s12] sm:$0x3]  ;;  %s787_s26 = sshll.u32 %s860_s25, 4  ;;  %s788_s26 = int_to_ptr.vmem [resolvable:$false] %s787_s26 }
  0x64   : > { %638 = vmatprep.subr.bf16.mxu0 %v637_v14  ;;  %v442_v35 = vld [vmem:[%s266_s30] sm:$0x3]  ;;  %s789_s29 = scalar_lea.vmem %s788_s26, 512  ;;  %p790_p0 = scmp.lt.s32.totalorder %s1082_s13, %s788_s26 }
  0x65   : > { %v451_v40 = vrot.slane %v442_v35, %v436_v34  ;;  %p791_p6 = scmp.lt.s32.totalorder %s789_s29, %s783_s19 }
  0x67   : > { %p792_p13 = por %p791_p6, %p790_p0 }
  0x69   : > { %p793_p7 = pnand %p792_p13, %p786_p5 }
  0x6b   : > { %640 = vmatpush3.bf16.xpose.msra.mxu0 %v639_v20 }
  0x6c   : > { %642 = vmatprep.subr.bf16.mxu0 %v641_v21  ;;  %v859_v21 = vmov 1966171168  }
  0x6d   : > { %v414_v22 = vunpack.c.l.s4 %v859_v21 }
  0x6f   : > { %v415_v24 = vunpack.c.0.s8 %v414_v22 }
  0x73   : > { %644 = vmatpush3.bf16.xpose.msra.mxu0 %v643_v26 }
  0x74   : > { %646 = vmatprep.subr.bf16.mxu0 %v645_v27  ;;  %v418_v27 = vsub.s32 %v415_v24, %v417_v25 }
  0x7b   : > { %648 = vmatpush3.bf16.xpose.msra.mxu0 %v647_v32 }
  0x7c   : > { %650 = vmatprep.subr.bf16.mxu0 %v649_v33  ;;  %v432_v33 = vsub.s32 0, %v417_v25 }
  0x83   : > { %652 = vmatpush3.bf16.xpose.msra.mxu0 %v651_v38 }
  0x84   : > { %654 = vmatprep.subr.bf16.mxu0 %v653_v39  ;;  %v447_v39 = vrot.slane %v442_v35, %v432_v33 }
  0x8b   : > { %656 = vmatpush3.bf16.xpose.msra.mxu0 %v655_v44 }
  0x8c   : > { %658 = vmatprep.subr.bf16.mxu0 %v657_v45 }
  0x93   : > { %660 = vmatpush3.bf16.xpose.msra.mxu0 %v659_v48 }
  0x9a   : > { %628 = vmatmul.mubr.f32.vlgmr.msra.gmra.mrb[0].mxu0 %v269_v15 }
 0x16d   : > { %v368_v49 = vpop.f32.mrb[0].mxu0 }
 0x16e   : > { %v373_v50 = vrot.slane %v368_v49, 4  ;;  %v370_v51 = vpop.f32.mrb[1].mxu0 }
 0x16f   : > { %v379_v52 = vrot.slane %v370_v51, 4 }
 0x170   : > { %v374_v53 = vadd.f32 %v373_v50, %v368_v49 }
 0x171   : > { %v380_v54 = vadd.f32 %v379_v52, %v370_v51 }
 0x172   : > { %v375_v55 = vrot.slane %v374_v53, 2 }
 0x173   : > { %v381_v56 = vrot.slane %v380_v54, 2 }
 0x174   : > { %v376_v57 = vadd.f32 %v375_v55, %v374_v53 }
 0x175   : > { %v382_v58 = vadd.f32 %v381_v56, %v380_v54 }
 0x176   : > { %v377_v59 = vrot.slane %v376_v57, 1 }
 0x177   : > { %v383_v60 = vrot.slane %v382_v58, 1 }
 0x178   : > { %v378_v61 = vadd.f32 %v377_v59, %v376_v57 }
 0x179   : > { %v384_v62 = vadd.f32 %v383_v60, %v382_v58 }
 0x17a   : > { %v385_v63 = vmul.f32 0.125, %v378_v61 }
 0x17b   : > { %v386_v0 = vmul.f32 0.125, %v384_v62 }
 0x17c   : > { %v387_v1 = vsub.f32 %v368_v49, %v385_v63 }
 0x17d   : > { %v388_v2 = vsub.f32 %v370_v51, %v386_v0 }
 0x17e   : > { %v389_v3 = vmul.f32 %v387_v1, %v387_v1 }
 0x17f   : > { %v390_v4 = vmul.f32 %v388_v2, %v388_v2 }
 0x180   : > { %v391_v5 = vrot.slane %v389_v3, 4 }
 0x181   : > { %v397_v6 = vrot.slane %v390_v4, 4 }
 0x182   : > { %v392_v7 = vadd.f32 %v391_v5, %v389_v3 }
 0x183   : > { %v398_v8 = vadd.f32 %v397_v6, %v390_v4 }
 0x184   : > { %v393_v9 = vrot.slane %v392_v7, 2 }
 0x185   : > { %v399_v10 = vrot.slane %v398_v8, 2 }
 0x186   : > { %v394_v11 = vadd.f32 %v393_v9, %v392_v7 }
 0x187   : > { %v400_v12 = vadd.f32 %v399_v10, %v398_v8 }
 0x188   : > { %v395_v13 = vrot.slane %v394_v11, 1 }
 0x189   : > { %v401_v14 = vrot.slane %v400_v12, 1 }
 0x18a   : > { %v396_v15 = vadd.f32 %v395_v13, %v394_v11 }
 0x18b   : > { %v402_v16 = vadd.f32 %v401_v14, %v400_v12 }
 0x18c   : > { %v403_v17 = vmul.f32 0.125, %v396_v15 }
 0x18d   : > { %v404_v18 = vmul.f32 0.125, %v402_v16 }
 0x18e   : > { %v406_v19 = vadd.f32 1e-05, %v403_v17 }
 0x18f   : > { %v407_v20 = vadd.f32 1e-05, %v404_v18 }
 0x190   : > { %721 = vrsqrt.f32 %v406_v19 }
 0x191   : > { %723 = vrsqrt.f32 %v407_v20 }
 0x19a   : > { %v722_v26 = vpop.eup %721 }
 0x19b   : > { %v724_v28 = vpop.eup %723 }
 0x19c   : > { %v412_v29 = vcombine.low %v722_v26, %v724_v28 }
 0x19e   : > { %v419_v30 = vrot.slane %v412_v29, %v418_v27 }
 0x1a0   : > { %v426_v32 = vrot.slane %v419_v30, %v418_v27 }
 0x1a2   : > { %v428_v36 = vmul.f32 %v426_v32, %v405_v31 }
 0x1a4   : > { %v433_v37 = vrot.slane %v428_v36, %v432_v33  ;;  %v437_v38 = vrot.slane %v428_v36, %v436_v34 }
 0x1a6   : > { %v440_v41 = vmul.f32 %v433_v37, %v387_v1  ;;  %v441_v42 = vmul.f32 %v437_v38, %v388_v2 }
 0x1a8   : > { %v454_v43 = vadd.f32 %v447_v39, %v440_v41  ;;  %v455_v44 = vadd.f32 %v451_v40, %v441_v42 }
 0x1aa   : > { %v456_v45 = vmax.f32 %v454_v43, 0.0  ;;  %v457_v46 = vmax.f32 %v455_v44, 0.0 }
 0x1ac   : > { %458 = vst [vmem:[%s256_s11] sm:$0xff] %v456_v45  ;;  %459 = vst [vmem:[%s256_s11 + $0x8] sm:$0xff] %v457_v46 }
 0x1ad   : > { %796 = shalt.err (!%p793_p7)
}
 0x1ae   : > { %s797_s5 = scalar_lea.hbm %s1080_s9, 256  ;;  %s801_s20 = scalar_lea.hbm %s1128_s4, 512 }
 0x1af   : > { %p798_p3 = scmp.ne.s32.totalorder %s1080_s9, %s797_s5  ;;  %p802_p8 = scmp.lt.u32.totalorder %s1080_s9, %s1128_s4 }
 0x1b0   : > { %p803_p11 = scmp.lt.u32.totalorder %s801_s20, %s797_s5  ;;  %p805_p10 = scmp.lt.u32.totalorder %s797_s5, %s1080_s9 }
 0x1b1   : > { %p799_p12 = pnand %p798_p3, %p1147_p2 }
 0x1b2   : > { %p804_p9 = por %p803_p11, %p802_p8 }
 0x1b3   : > { %p800_p1 = pneg %p799_p12 }
 0x1b4   : > { %p806_p4 = por %p805_p10, %p804_p9 }
 0x1b6   : > { %p807_p5 = pnand %p806_p4, %p800_p1 }
 0x1b8   : > { %810 = shalt.err (!%p807_p5)
}
 0x1b9   : > { %667 = dma.vmem_to_hbm [thread:$0]  (%p1147_p2), %s1082_s13, 256, %s1080_s9, %s461_s23  }
 0x1ba PF: > { %s487_s7 = sand.u32 1, %s841_s15   ;;  %p1148_p0 = scmp.ne.s32.totalorder %s1137_s28, 0 }
 0x1bb   : > { %p1149_p6 = scmp.ge.s32.totalorder %s853_s18, 2  ;;  %s488_s10 = scalar_lea.sflag [#allocation4], %s487_s7 }
 0x1bd   : > { %p678_p13 = pnand %p1149_p6, %p1148_p0 }
 0x1bf   : > { %836 = dma.done.wait (!%p678_p13), %s488_s10, 256  }
 0x1c0   : > { %838 = vsyncadd (!%p678_p13), %s488_s10, 4294967040  ;;  %p18_p7 = scmp.ge.s32.totalorder %s911_s21, 4   ;;  %s1150_s15 = smov %s845_s16 }
 0x1c1   : > { %s1151_s16 = smov %s849_s17  ;;  %s1152_s17 = smov %s923_s24 }
 0x1c2   : > { %s1153_s18 = smov %s911_s21  ;;  %20 = sbr.rel (!%p18_p7) target bundleno = 6 (0x6), region = 92 }
 0x1c9   :  { %493 = vsyncpa [#allocation3], 1 }
 0x1ca   :  { %495 = vsyncpa [#allocation3 + $0x1], 1 }
 0x1cb   :  { %496 = vsyncpa [#allocation6], 1 }
 0x1cc   :  { %498 = vsyncpa [#allocation6 + $0x1], 1 }
 0x1cd   :  { %499 = vsyncpa [#allocation4], 1 }
 0x1ce   :  { %501 = vsyncpa [#allocation4 + $0x1], 1 }

</bundles_post_ra>
